<compile_context>
chip_gen: v7x
topology: tpu7x:2x2x1
jax: 0.10.0
libtpu: 0.0.40
codegen_flags: <defaults>
</compile_context>

<pallas_src>
import functools

import jax
import jax.numpy as jnp
from jax.experimental import pallas as pl
from jax.experimental.pallas import tpu as pltpu


# ---------------------------------------------------------------------------
# Backward Pallas kernel: o = (-alpha) * g, with -alpha folded in as a constant
# ---------------------------------------------------------------------------
def _make_scale_kernel(neg_alpha):
    def kernel(g_ref, o_ref):
        # neg_alpha is a static Python float (weak-typed) -> result keeps g's dtype.
        o_ref[...] = g_ref[...] * neg_alpha

    return kernel


_LANE_CANDIDATES = (1024, 512, 256, 128)   # lane-dense last dims (multiples of 128)
_TARGET_BLOCK_BYTES = 2 * 1024 * 1024      # ~2 MiB blocks: ~85% of HBM roofline and
                                           # safe under default scoped VMEM everywhere.


def _sublane_multiple(itemsize):
    # f32 -> 8 rows, bf16/f16 -> 16, int8/fp8 -> 32 (sub-32-bit packs along sublanes;
    # sublane-aligned tiles keep stores as unmasked dense vst).
    return max(8, 32 // int(itemsize))


def _choose_tiling(n, itemsize):
    """Pick (rows, lanes, tile_rows) for a flat n-element view, or None => jnp fallback."""
    if n == 0 or n % 128 != 0:
        return None
    sub = _sublane_multiple(itemsize)

    # Prefer the widest lane count whose row count is sublane-aligned; otherwise the
    # widest lane count with at least one sublane group (last block gets masked).
    aligned = None
    unaligned = None
    for lanes in _LANE_CANDIDATES:
        if n % lanes != 0:
            continue
        rows = n // lanes
        if rows < sub:
            continue
        if rows % sub == 0 and aligned is None:
            aligned = (rows, lanes)
        if unaligned is None:
            unaligned = (rows, lanes)
    pick = aligned if aligned is not None else unaligned
    if pick is None:
        return None
    rows, lanes = pick

    # ~2 MiB tile rows, rounded down to the sublane multiple, never exceeding rows.
    budget = max(sub, _TARGET_BLOCK_BYTES // (lanes * itemsize))
    budget -= budget % sub
    tile = min(budget, max(sub, rows - rows % sub))

    # v7x megacore: with a "parallel" grid axis, aim for >= 4 grid steps so each
    # TensorCore gets a >= 2-step pipeline (prefetch-while-compute overlap).
    if rows >= 4 * sub:
        quarter = rows // 4
        quarter = max(sub, quarter - quarter % sub)
        tile = min(tile, quarter)
    return rows, lanes, tile


def _neg_scale_pallas(g, neg_alpha):
    """Compute neg_alpha * g via a tiled, lane-dense Pallas kernel."""
    tiling = _choose_tiling(g.size, jnp.dtype(g.dtype).itemsize)
    if tiling is None:
        # Ragged / tiny size: let XLA fuse the trivial elementwise multiply.
        return g * neg_alpha

    rows, lanes, tile = tiling
    grid_steps = pl.cdiv(rows, tile)          # partial last block is masked by Pallas
    g2d = g.reshape(rows, lanes)
    out2d = pl.pallas_call(
        _make_scale_kernel(neg_alpha),
        out_shape=jax.ShapeDtypeStruct((rows, lanes), g.dtype),
        grid=(grid_steps,),
        in_specs=[pl.BlockSpec((tile, lanes), lambda i: (i, 0))],
        out_specs=pl.BlockSpec((tile, lanes), lambda i: (i, 0)),
        input_output_aliases={0: 0},          # scale in place: no extra HBM allocation
        compiler_params=pltpu.CompilerParams(
            dimension_semantics=("parallel",)),
    )(g2d)
    return out2d.reshape(g.shape)


# ---------------------------------------------------------------------------
# custom_vjp: identity forward, gradient reversal backward
# ---------------------------------------------------------------------------
@functools.partial(jax.custom_vjp, nondiff_argnums=(1, 2))
def revgrad(x, alpha, use_pallas=True):
    # Forward of gradient reversal is the identity: no Pallas call, no HBM copy.
    return x


def _revgrad_fwd(x, alpha, use_pallas):
    return x, None


def _revgrad_bwd(alpha, use_pallas, _residuals, g):
    neg_alpha = -float(alpha)
    if not use_pallas:
        # Fastest option overall: a constant scale fuses into the cotangent
        # producer in XLA (zero extra HBM passes).
        return (g * neg_alpha,)
    return (_neg_scale_pallas(g, neg_alpha),)


revgrad.defvjp(_revgrad_fwd, _revgrad_bwd)


class GradientReversal:
    """JAX/Pallas equivalent of the PyTorch GradientReversal module.

    alpha is a non-trainable static scalar (mirrors the PyTorch buffer).
    Set use_pallas=False to let XLA fuse the backward scale instead of running
    the standalone Pallas pass.
    """

    def __init__(self, alpha, use_pallas=True):
        self.alpha = float(alpha)
        self.use_pallas = bool(use_pallas)

    def __call__(self, x):
        return revgrad(x, self.alpha, self.use_pallas)


# ---------------------------------------------------------------------------
# Demo / correctness checks
# ---------------------------------------------------------------------------
if __name__ == "__main__":
    key = jax.random.PRNGKey(0)
    module = GradientReversal(alpha=0.5)

    # 1) Small NCHW input: batch=2, channels=4, spatial=16x16.
    x = jax.random.normal(key, (2, 4, 16, 16), dtype=jnp.float32)
    y = jax.block_until_ready(module(x))
    assert y.shape == x.shape and y.dtype == x.dtype
    assert jnp.allclose(y, x), "forward must be identity"

    gx = jax.block_until_ready(jax.grad(lambda a: jnp.sum(module(a) * 2.0))(x))
    assert jnp.allclose(gx, jnp.full_like(x, -module.alpha * 2.0)), \
        "backward must be -alpha * upstream grad"

    # 2) Larger case: exercises the multi-step (>=4) parallel tiled grid path.
    x2 = jax.random.normal(jax.random.PRNGKey(1), (8, 64, 32, 32), jnp.float32)
    g2 = jax.block_until_ready(jax.grad(lambda a: jnp.sum(module(a) * 3.0))(x2))
    assert jnp.allclose(g2, jnp.full_like(x2, -module.alpha * 3.0))

    # 3) bf16 case: exercises dtype-aware (16-row) sublane tiling.
    x3 = jax.random.normal(jax.random.PRNGKey(2), (4, 8, 16, 16), jnp.bfloat16)
    loss3 = lambda a: jnp.sum(module(a) * 2.0).astype(jnp.float32)
    g3 = jax.block_until_ready(jax.grad(loss3)(x3))
    assert jnp.allclose(g3.astype(jnp.float32), -module.alpha * 2.0)

    # 4) Awkward row count: exercises the cdiv grid with a masked partial block.
    x4 = jax.random.normal(jax.random.PRNGKey(3), (7, 5, 2, 128), jnp.float32)
    g4 = jax.block_until_ready(jax.grad(lambda a: jnp.sum(module(a) * 1.5))(x4))
    assert jnp.allclose(g4, jnp.full_like(x4, -module.alpha * 1.5))

    # 5) Ragged size (not a multiple of 128): safe fused jnp fallback path.
    x5 = jax.random.normal(jax.random.PRNGKey(4), (2, 3, 5, 7), jnp.float32)
    g5 = jax.block_until_ready(jax.grad(lambda a: jnp.sum(module(a) * 4.0))(x5))
    assert jnp.allclose(g5, jnp.full_like(x5, -module.alpha * 4.0))

    print("KERNEL_OK")
</pallas_src>

<mosaic_0001>
module attributes {stable_mosaic.version = 11 : i64} {
  func.func @kernel(%arg0: i32, %arg1: memref<8x256xf32, #tpu.memory_space<vmem>>, %arg2: memref<8x256xf32, #tpu.memory_space<vmem>>) attributes {dimension_semantics = [#tpu.dimension_semantics<parallel>], iteration_bounds = array<i64: 1>, scalar_prefetch = 0 : i64, scratch_operands = 0 : i64, tpu.core_type = #tpu.core_type<tc>, window_params = [{transform_indices = @transform_0, window_bounds = array<i64: 8, 256>}, {transform_indices = @transform_1, window_bounds = array<i64: 8, 256>}]} {
    %c0 = arith.constant 0 : index
    %c0_0 = arith.constant 0 : index
    %0 = vector.load %arg1[%c0, %c0_0] : memref<8x256xf32, #tpu.memory_space<vmem>>, vector<8x256xf32>
    %cst = arith.constant -5.000000e-01 : f32
    %1 = vector.broadcast %cst : f32 to vector<8x256xf32>
    %2 = arith.mulf %0, %1 : vector<8x256xf32>
    %c0_1 = arith.constant 0 : index
    %c0_2 = arith.constant 0 : index
    %3 = vector.load %arg2[%c0_1, %c0_2] : memref<8x256xf32, #tpu.memory_space<vmem>>, vector<8x256xf32>
    tpu.vector_store %arg2[%c0_1, %c0_2], %2 {strides = array<i32>} : memref<8x256xf32, #tpu.memory_space<vmem>>, vector<8x256xf32>,
    return
  }
  func.func @transform_0(%arg0: i32) -> (i32, i32) {
    %c0_i32 = arith.constant 0 : i32
    %c0_i32_0 = arith.constant 0 : i32
    return %arg0, %c0_i32 : i32, i32
  }
  func.func @transform_1(%arg0: i32) -> (i32, i32) {
    %c0_i32 = arith.constant 0 : i32
    %c0_i32_0 = arith.constant 0 : i32
    return %arg0, %c0_i32 : i32, i32
  }
}

</mosaic_0001>

<bundles_post_ra>
// kernel: tpu_custom_call.1
= control target key start
LH: loop header
LB: loop body
LE: loop exit
PB: predicated region body
PF: predicated region fallthrough
CT: control target
= control target key end

     0   :  { %6 = vsyncpa [#allocation3], 0  ;;  %s128_s0 = inlined_call_operand.hbm [shape: f32[8,256], index: 0, kind: input, shape index: {}, may-alias: {0,1}]   ;;  %s129_s1 = inlined_call_operand.hbm [shape: f32[8,256], index: 1, kind: output, shape index: {}, may-alias: {0,1}]  }
   0x1   :  { %7 = vsyncpa [#allocation4], 0  ;;  %s92_s6 = smov [#allocation2]   ;;  %s44_s10 = scalar_lea.hbm %s128_s0, 256 }
   0x2   :  { %s14_s7 = sshll.u32 %s92_s6, 4  ;;  %p45_p0 = scmp.ne.s32.totalorder %s128_s0, %s44_s10  ;;  %s15_s7 = int_to_ptr.vmem [resolvable:$true] %s14_s7 }
   0x3   :  { %p48_p1 = scmp.lt.u32.totalorder %s44_s10, %s128_s0 }
   0x5   :  { %p50_p2 = pnand %p48_p1, %p45_p0 }
   0x7   :  { %53 = shalt.err (!%p50_p2)
}
   0x8   :  { %s54_s15 = scalar_lea.vmem %s15_s7, 256  ;;  %p59_p4 = scmp.lt.s32.totalorder %s15_s7, %s15_s7 }
   0x9   :  { %p55_p3 = scmp.ne.s32.totalorder %s15_s7, %s54_s15  ;;  %p60_p5 = scmp.lt.s32.totalorder %s54_s15, %s54_s15 }
   0xb   :  { %p61_p6 = por %p60_p5, %p59_p4 }
   0xd   :  { %p62_p7 = pnand %p61_p6, %p55_p3 }
   0xf   :  { %65 = shalt.err (!%p62_p7)
}
  0x10   :  { %17 = dma.hbm_to_vmem [thread:$0]  %s128_s0, 256, %s15_s7, [#allocation3]  }
  0x11   :  { %88 = dma.done.wait [#allocation3], 256  }
  0x12   :  { %89 = vsyncadd [#allocation3], 4294967040  ;;  %s93_s18 = smov [#allocation5]   ;;  %v21_v0 = vld [vmem:[#allocation2] sm:$0xff]  ;;  %v22_v1 = vld [vmem:[#allocation2 + $0x8] sm:$0xff] }
  0x13   :  { %s33_s19 = sshll.u32 %s93_s18, 4  ;;  %v23_v2 = vmul.f32 -0.5, %v21_v0  ;;  %v24_v3 = vmul.f32 -0.5, %v22_v1  ;;  %s34_s19 = int_to_ptr.vmem [resolvable:$true] %s33_s19 }
  0x14   :  { %s66_s20 = scalar_lea.vmem %s34_s19, 256  ;;  %p71_p9 = scmp.lt.s32.totalorder %s34_s19, %s34_s19 }
  0x15   :  { %25 = vst [vmem:[#allocation5] sm:$0xff] %v23_v2  ;;  %26 = vst [vmem:[#allocation5 + $0x8] sm:$0xff] %v24_v3  ;;  %p67_p8 = scmp.ne.s32.totalorder %s34_s19, %s66_s20  ;;  %p72_p10 = scmp.lt.s32.totalorder %s66_s20, %s66_s20 }
  0x17   :  { %p73_p11 = por %p72_p10, %p71_p9 }
  0x19   :  { %p74_p12 = pnand %p73_p11, %p67_p8 }
  0x1b   :  { %77 = shalt.err (!%p74_p12)
}
  0x1c   :  { %s78_s22 = scalar_lea.hbm %s129_s1, 256 }
  0x1d   :  { %p79_p13 = scmp.ne.s32.totalorder %s129_s1, %s78_s22  ;;  %p82_p0 = scmp.lt.u32.totalorder %s78_s22, %s129_s1 }
  0x1f   :  { %p84_p1 = pnand %p82_p0, %p79_p13 }
  0x21   :  { %87 = shalt.err (!%p84_p1)
}
  0x22   :  { %36 = dma.vmem_to_hbm [thread:$0]  %s34_s19, 256, %s129_s1, [#allocation4]  }
  0x23   :  { %90 = dma.done.wait [#allocation4], 256  }
  0x24   :  { %91 = vsyncadd [#allocation4], 4294967040 }
  0x25   :  { %40 = vsyncpa [#allocation3], 1 }
  0x26   :  { %41 = vsyncpa [#allocation4], 1 }

</bundles_post_ra>
